<compile_context>
chip_gen: v6e
topology: v6e:2x2x1
jax: 0.10.0
libtpu: 0.0.40
codegen_flags: <defaults>
</compile_context>

<pallas_src>
import functools

import jax
import jax.numpy as jnp
from jax import lax
from jax.experimental import pallas as pl
from jax.experimental.pallas import tpu as pltpu


# ----------------------------------------------------------------------------
# Pallas kernels
# ----------------------------------------------------------------------------

def conv1x1_bn_kernel(x_ref, w_ref, scale_ref, bias_ref, o_ref, *, apply_relu):
    # x_ref: (tm, Cin), w_ref: (Cin, Cout), scale/bias: (1, Cout)
    acc = jnp.dot(x_ref[...], w_ref[...], preferred_element_type=jnp.float32)
    y = acc * scale_ref[...] + bias_ref[...]
    if apply_relu:
        y = jnp.maximum(y, 0.0)
    o_ref[...] = y.astype(o_ref.dtype)


def conv1x1_bn_res_kernel(x_ref, w_ref, scale_ref, bias_ref, res_ref, o_ref,
                          *, apply_relu):
    # Same as above, plus a fused residual add before the (optional) ReLU.
    acc = jnp.dot(x_ref[...], w_ref[...], preferred_element_type=jnp.float32)
    y = acc * scale_ref[...] + bias_ref[...] + res_ref[...].astype(jnp.float32)
    if apply_relu:
        y = jnp.maximum(y, 0.0)
    o_ref[...] = y.astype(o_ref.dtype)


def conv3x3_bn_relu_kernel(xp_ref, w_ref, scale_ref, bias_ref, o_ref):
    # xp_ref: (1, H+2, W+2, Cin) padded image, w_ref: (9, Cin, Cout)
    _, H, W, Cout = o_ref.shape
    Cin = xp_ref.shape[-1]
    x = xp_ref[0]                                      # (H+2, W+2, Cin)
    acc = jnp.zeros((H * W, Cout), jnp.float32)
    # 3 W-shifted copies (dx) instead of 9 unaligned 3-D slices; the dy slices
    # are contiguous leading-axis slices feeding the MXU directly.
    for dx in range(3):
        xs = x[:, dx:dx + W, :]                        # (H+2, W, Cin)
        for dy in range(3):
            win = xs[dy:dy + H].reshape(H * W, Cin)    # contiguous view
            acc = acc + jnp.dot(win, w_ref[dy * 3 + dx],
                                preferred_element_type=jnp.float32)
    y = acc * scale_ref[...] + bias_ref[...]
    y = jnp.maximum(y, 0.0)
    o_ref[0] = y.reshape(H, W, Cout).astype(o_ref.dtype)


def channel_attn_stats_kernel(x_ref, w0_ref, w1_ref, o_ref):
    # Per-image channel-attention weights.
    # x_ref: (1, H, W, C); w0: (C, hidden); w1: (hidden, C); o_ref: (1, 1, C)
    _, H, W, C = x_ref.shape
    x = x_ref[0].astype(jnp.float32).reshape(H * W, C)
    avg = jnp.mean(x, axis=0, keepdims=True)           # (1, C)
    mx = jnp.max(x, axis=0, keepdims=True)             # (1, C)
    stats = jnp.concatenate([avg, mx], axis=0)         # (2, C) -> shared MXU MLP
    h = jnp.maximum(jnp.dot(stats, w0_ref[...],
                            preferred_element_type=jnp.float32), 0.0)
    z = jnp.dot(h, w1_ref[...], preferred_element_type=jnp.float32)  # (2, C)
    o_ref[0] = jax.nn.sigmoid(z[0:1] + z[1:2]).astype(o_ref.dtype)


def _attn_apply_body(x_ref, ca_ref, ws_ref, o_ref, res_ref):
    # Fused: channel-attention scaling + 7x7 spatial attention
    # (+ optional residual add and final ReLU).
    # x_ref: (1, H, W, C); ca_ref: (1, 1, C); ws_ref: SMEM (98,) =
    # [49 avg taps, 49 max taps]; res_ref: (1, H, W, C) or None.
    _, H, W, C = x_ref.shape
    x = x_ref[0].astype(jnp.float32) * ca_ref[0]       # channel attention
    avg = jnp.mean(x, axis=-1)                         # (H, W)
    mx = jnp.max(x, axis=-1)                           # (H, W)

    def pad3(m):                                       # zero pad 3 per side
        zc = jnp.zeros((3, W), jnp.float32)
        m = jnp.concatenate([zc, m, zc], axis=0)
        zr = jnp.zeros((H + 6, 3), jnp.float32)
        return jnp.concatenate([zr, m, zr], axis=1)

    avg_p = pad3(avg)
    max_p = pad3(mx)
    acc = jnp.zeros((H, W), jnp.float32)
    for dx in range(7):
        a_col = avg_p[:, dx:dx + W]                    # one lane shift per dx
        m_col = max_p[:, dx:dx + W]
        for dy in range(7):
            k = dy * 7 + dx
            acc = acc + a_col[dy:dy + H] * ws_ref[k] \
                      + m_col[dy:dy + H] * ws_ref[49 + k]
    y = x * jax.nn.sigmoid(acc)[:, :, None]
    if res_ref is not None:
        y = jnp.maximum(y + res_ref[0].astype(jnp.float32), 0.0)
    o_ref[0] = y.astype(o_ref.dtype)


def attn_apply_kernel(x_ref, ca_ref, ws_ref, o_ref):
    _attn_apply_body(x_ref, ca_ref, ws_ref, o_ref, None)


def attn_apply_res_kernel(x_ref, ca_ref, ws_ref, res_ref, o_ref):
    _attn_apply_body(x_ref, ca_ref, ws_ref, o_ref, res_ref)


# ----------------------------------------------------------------------------
# Wrappers around pallas_call
# ----------------------------------------------------------------------------

def _round_up(x, m):
    return (x + m - 1) // m * m


def _pick_row_tile(M):
    # Largest tile from a fixed menu that still leaves >= 2 grid steps
    # (pipelining + megacore sharding); fall back to the whole (padded) M.
    for t in (1024, 512, 256, 128):
        if M >= 2 * t:
            return t
    return _round_up(M, 8)


def _conv1x1_bn(x_nhwc, w, scale, bias, *, relu, residual=None):
    N, H, W, Cin = x_nhwc.shape
    Cout = w.shape[1]
    M = N * H * W
    tm = _pick_row_tile(M)
    Mp = _round_up(M, tm)

    x2 = x_nhwc.reshape(M, Cin)
    if Mp != M:
        x2 = jnp.pad(x2, ((0, Mp - M), (0, 0)))

    args = [x2, w, scale.reshape(1, Cout), bias.reshape(1, Cout)]
    in_specs = [
        pl.BlockSpec((tm, Cin), lambda i: (i, 0)),
        pl.BlockSpec((Cin, Cout), lambda i: (0, 0)),
        pl.BlockSpec((1, Cout), lambda i: (0, 0)),
        pl.BlockSpec((1, Cout), lambda i: (0, 0)),
    ]
    if residual is not None:
        r2 = residual.reshape(M, Cout)
        if Mp != M:
            r2 = jnp.pad(r2, ((0, Mp - M), (0, 0)))
        args.append(r2)
        in_specs.append(pl.BlockSpec((tm, Cout), lambda i: (i, 0)))
        kernel = functools.partial(conv1x1_bn_res_kernel, apply_relu=relu)
    else:
        kernel = functools.partial(conv1x1_bn_kernel, apply_relu=relu)

    out = pl.pallas_call(
        kernel,
        out_shape=jax.ShapeDtypeStruct((Mp, Cout), x_nhwc.dtype),
        grid=(Mp // tm,),
        in_specs=in_specs,
        out_specs=pl.BlockSpec((tm, Cout), lambda i: (i, 0)),
        compiler_params=pltpu.CompilerParams(dimension_semantics=("parallel",)),
    )(*args)
    return out[:M].reshape(N, H, W, Cout)


def _conv3x3_bn_relu(x_nhwc, w9, scale, bias):
    N, H, W, Cin = x_nhwc.shape
    Cout = w9.shape[-1]
    xp = jnp.pad(x_nhwc, ((0, 0), (1, 1), (1, 1), (0, 0)))
    return pl.pallas_call(
        conv3x3_bn_relu_kernel,
        out_shape=jax.ShapeDtypeStruct((N, H, W, Cout), x_nhwc.dtype),
        grid=(N,),
        in_specs=[
            pl.BlockSpec((1, H + 2, W + 2, Cin), lambda n: (n, 0, 0, 0)),
            pl.BlockSpec((9, Cin, Cout), lambda n: (0, 0, 0)),
            pl.BlockSpec((1, Cout), lambda n: (0, 0)),
            pl.BlockSpec((1, Cout), lambda n: (0, 0)),
        ],
        out_specs=pl.BlockSpec((1, H, W, Cout), lambda n: (n, 0, 0, 0)),
        compiler_params=pltpu.CompilerParams(dimension_semantics=("parallel",)),
    )(xp, w9, scale.reshape(1, Cout), bias.reshape(1, Cout))


def _channel_attn_weights(x_nhwc, w0, w1):
    N, H, W, C = x_nhwc.shape
    hidden = w0.shape[1]
    return pl.pallas_call(
        channel_attn_stats_kernel,
        out_shape=jax.ShapeDtypeStruct((N, 1, C), jnp.float32),
        grid=(N,),
        in_specs=[
            pl.BlockSpec((1, H, W, C), lambda n: (n, 0, 0, 0)),
            pl.BlockSpec((C, hidden), lambda n: (0, 0)),
            pl.BlockSpec((hidden, C), lambda n: (0, 0)),
        ],
        out_specs=pl.BlockSpec((1, 1, C), lambda n: (n, 0, 0)),
        compiler_params=pltpu.CompilerParams(dimension_semantics=("parallel",)),
    )(x_nhwc, w0, w1)


def _attn_apply(x_nhwc, ca, ws_flat, residual=None):
    N, H, W, C = x_nhwc.shape
    args = [x_nhwc, ca, ws_flat]
    in_specs = [
        pl.BlockSpec((1, H, W, C), lambda n: (n, 0, 0, 0)),
        pl.BlockSpec((1, 1, C), lambda n: (n, 0, 0)),
        pl.BlockSpec(memory_space=pltpu.MemorySpace.SMEM),
    ]
    if residual is not None:
        args.append(residual)
        in_specs.append(pl.BlockSpec((1, H, W, C), lambda n: (n, 0, 0, 0)))
        kernel = attn_apply_res_kernel
    else:
        kernel = attn_apply_kernel
    return pl.pallas_call(
        kernel,
        out_shape=jax.ShapeDtypeStruct((N, H, W, C), x_nhwc.dtype),
        grid=(N,),
        in_specs=in_specs,
        out_specs=pl.BlockSpec((1, H, W, C), lambda n: (n, 0, 0, 0)),
        compiler_params=pltpu.CompilerParams(dimension_semantics=("parallel",)),
    )(*args)


def _block_attention(x, attn_p, residual=None):
    ca = _channel_attn_weights(x, attn_p["w0"], attn_p["w1"])
    ws_flat = attn_p["ws"].T.reshape(-1)   # (98,): [49 avg taps, 49 max taps]
    return _attn_apply(x, ca, ws_flat, residual=residual)


def bottleneck_forward(x_nchw, p, attention=True):
    """Bottleneck(inplanes, planes, stride=1, downsample=None, attention=attention)."""
    x = jnp.transpose(x_nchw, (0, 2, 3, 1))            # NCHW -> NHWC
    identity = x
    assert x.shape[-1] == p["w3"].shape[1], \
        "stride/downsample path not supported: inplanes must equal planes*expansion"

    out = _conv1x1_bn(x, p["w1"], p["bn1_scale"], p["bn1_bias"], relu=True)
    if attention:
        out = _block_attention(out, p["attn1"])
    out = _conv3x3_bn_relu(out, p["w2"], p["bn2_scale"], p["bn2_bias"])
    if attention:
        out = _block_attention(out, p["attn2"])
    if attention:
        out = _conv1x1_bn(out, p["w3"], p["bn3_scale"], p["bn3_bias"], relu=False)
        # residual add + final ReLU fused into the last attention-apply kernel
        out = _block_attention(out, p["attn3"], residual=identity)
    else:
        # residual add + final ReLU fused into the last 1x1 conv
        out = _conv1x1_bn(out, p["w3"], p["bn3_scale"], p["bn3_bias"],
                          relu=True, residual=identity)
    return jnp.transpose(out, (0, 3, 1, 2))             # NHWC -> NCHW


# ----------------------------------------------------------------------------
# Deterministic parameter init (inference-mode BN folded to scale/bias)
# ----------------------------------------------------------------------------

def _init_bn(key, c):
    k1, k2, k3, k4 = jax.random.split(key, 4)
    gamma = jax.random.uniform(k1, (c,), jnp.float32, 0.5, 1.5)
    beta = 0.1 * jax.random.normal(k2, (c,), jnp.float32)
    mean = 0.1 * jax.random.normal(k3, (c,), jnp.float32)
    var = jax.random.uniform(k4, (c,), jnp.float32, 0.5, 1.5)
    scale = gamma / jnp.sqrt(var + 1e-5)
    bias = beta - mean * scale
    return scale, bias


def init_params(key, inplanes, planes, base_width=64, groups=1, expansion=4):
    width = int(planes * (base_width / 64.0)) * groups
    outp = planes * expansion
    ks = jax.random.split(key, 16)

    def w(k, shape):
        return 0.2 * jax.random.normal(k, shape, jnp.float32)

    def attn(k, c):
        k0, k1, k2 = jax.random.split(k, 3)
        hidden = c // 2
        return {"w0": w(k0, (c, hidden)),       # Linear(c -> hidden), stored transposed
                "w1": w(k1, (hidden, c)),       # Linear(hidden -> c), stored transposed
                "ws": w(k2, (49, 2))}           # 7x7 conv taps for [avg, max] channels

    p = {}
    p["w1"] = w(ks[0], (inplanes, width))                    # 1x1 conv (Cin, Cout)
    p["bn1_scale"], p["bn1_bias"] = _init_bn(ks[1], width)
    p["w2"] = w(ks[2], (9, width, width))                    # 3x3 conv (ky*3+kx, Cin, Cout)
    p["bn2_scale"], p["bn2_bias"] = _init_bn(ks[3], width)
    p["w3"] = w(ks[4], (width, outp))                        # 1x1 conv (Cin, Cout)
    p["bn3_scale"], p["bn3_bias"] = _init_bn(ks[5], outp)
    p["attn1"] = attn(ks[6], width)
    p["attn2"] = attn(ks[7], width)
    p["attn3"] = attn(ks[8], outp)
    return p


# ----------------------------------------------------------------------------
# Pure-JAX reference (NHWC) for correctness checking
# ----------------------------------------------------------------------------

def _ref_conv1x1_bn(x, w, scale, bias, relu):
    y = jnp.einsum("nhwc,cd->nhwd", x, w) * scale + bias
    return jnp.maximum(y, 0.0) if relu else y


def _ref_conv3x3_bn_relu(x, w9, scale, bias):
    Cin, Cout = w9.shape[1], w9.shape[2]
    w = w9.reshape(3, 3, Cin, Cout)
    y = lax.conv_general_dilated(x, w, (1, 1), ((1, 1), (1, 1)),
                                 dimension_numbers=("NHWC", "HWIO", "NHWC"))
    return jnp.maximum(y * scale + bias, 0.0)


def _ref_channel_attn(x, w0, w1):
    avg = jnp.mean(x, axis=(1, 2))
    mx = jnp.max(x, axis=(1, 2))
    f = lambda v: jnp.maximum(v @ w0, 0.0) @ w1
    a = jax.nn.sigmoid(f(avg) + f(mx))
    return x * a[:, None, None, :]


def _ref_spatial_attn(x, w49):
    avg = jnp.mean(x, axis=-1, keepdims=True)
    mx = jnp.max(x, axis=-1, keepdims=True)
    m = jnp.concatenate([avg, mx], axis=-1)
    w = w49.reshape(7, 7, 2, 1)
    y = lax.conv_general_dilated(m, w, (1, 1), ((3, 3), (3, 3)),
                                 dimension_numbers=("NHWC", "HWIO", "NHWC"))
    return x * jax.nn.sigmoid(y)


def bottleneck_reference(x_nchw, p, attention=True):
    x = jnp.transpose(x_nchw, (0, 2, 3, 1))
    identity = x
    out = _ref_conv1x1_bn(x, p["w1"], p["bn1_scale"], p["bn1_bias"], True)
    if attention:
        out = _ref_spatial_attn(_ref_channel_attn(out, p["attn1"]["w0"], p["attn1"]["w1"]),
                                p["attn1"]["ws"])
    out = _ref_conv3x3_bn_relu(out, p["w2"], p["bn2_scale"], p["bn2_bias"])
    if attention:
        out = _ref_spatial_attn(_ref_channel_attn(out, p["attn2"]["w0"], p["attn2"]["w1"]),
                                p["attn2"]["ws"])
    out = _ref_conv1x1_bn(out, p["w3"], p["bn3_scale"], p["bn3_bias"], False)
    if attention:
        out = _ref_spatial_attn(_ref_channel_attn(out, p["attn3"]["w0"], p["attn3"]["w1"]),
                                p["attn3"]["ws"])
    out = jnp.maximum(out + identity, 0.0)
    return jnp.transpose(out, (0, 3, 1, 2))


# ----------------------------------------------------------------------------

if __name__ == "__main__":
    key = jax.random.PRNGKey(0)
    k_x, k_p = jax.random.split(key)

    # Bottleneck(inplanes=16, planes=4, stride=1, downsample=None, attention=True)
    N, C_in, H, W = 2, 16, 16, 16
    planes = 4
    x = jax.random.normal(k_x, (N, C_in, H, W), jnp.float32)   # NCHW, like PyTorch
    params = init_params(k_p, inplanes=C_in, planes=planes)

    out = bottleneck_forward(x, params, attention=True)
    out = jax.block_until_ready(out)

    ref = bottleneck_reference(x, params, attention=True)
    assert out.shape == (N, planes * 4, H, W), out.shape
    max_err = float(jnp.max(jnp.abs(out - ref)))
    assert max_err < 1e-3, f"mismatch vs reference: {max_err}"

    # Also exercise the attention=False path (fused residual in conv3).
    out2 = jax.block_until_ready(bottleneck_forward(x, params, attention=False))
    ref2 = bottleneck_reference(x, params, attention=False)
    max_err2 = float(jnp.max(jnp.abs(out2 - ref2)))
    assert max_err2 < 1e-3, f"mismatch vs reference (no attention): {max_err2}"

    print("KERNEL_OK")
</pallas_src>

<mosaic_0001>
module attributes {stable_mosaic.version = 11 : i64} {
  func.func @conv1x1_bn_kernel(%arg0: i32, %arg1: memref<256x16xf32, #tpu.memory_space<vmem>>, %arg2: memref<16x4xf32, #tpu.memory_space<vmem>>, %arg3: memref<1x4xf32, #tpu.memory_space<vmem>>, %arg4: memref<1x4xf32, #tpu.memory_space<vmem>>, %arg5: memref<256x4xf32, #tpu.memory_space<vmem>>) attributes {dimension_semantics = [#tpu.dimension_semantics<parallel>], iteration_bounds = array<i64: 2>, scalar_prefetch = 0 : i64, scratch_operands = 0 : i64, tpu.core_type = #tpu.core_type<tc>, window_params = [{transform_indices = @transform_0, window_bounds = array<i64: 256, 16>}, {pipeline_mode = #tpu.pipeline_mode<synchronous>, transform_indices = @transform_1, window_bounds = array<i64: 16, 4>}, {pipeline_mode = #tpu.pipeline_mode<synchronous>, transform_indices = @transform_2, window_bounds = array<i64: 1, 4>}, {pipeline_mode = #tpu.pipeline_mode<synchronous>, transform_indices = @transform_3, window_bounds = array<i64: 1, 4>}, {transform_indices = @transform_4, window_bounds = array<i64: 256, 4>}]} {
    %c0 = arith.constant 0 : index
    %c0_0 = arith.constant 0 : index
    %0 = vector.load %arg1[%c0, %c0_0] : memref<256x16xf32, #tpu.memory_space<vmem>>, vector<256x16xf32>
    %c0_1 = arith.constant 0 : index
    %c0_2 = arith.constant 0 : index
    %1 = vector.load %arg2[%c0_1, %c0_2] : memref<16x4xf32, #tpu.memory_space<vmem>>, vector<16x4xf32>
    %cst = arith.constant dense<0.000000e+00> : vector<256x4xf32>
    %2 = tpu.matmul %0, %1, %cst {dimension_numbers = #tpu.dot_dimension_numbers<[1], [0], [0], [1], [0, 0, 1, 1], [], []>} : vector<256x16xf32>, vector<16x4xf32>, vector<256x4xf32> -> vector<256x4xf32>
    %c0_3 = arith.constant 0 : index
    %c0_4 = arith.constant 0 : index
    %3 = vector.load %arg3[%c0_3, %c0_4] : memref<1x4xf32, #tpu.memory_space<vmem>>, vector<1x4xf32>
    %4 = vector.broadcast %3 : vector<1x4xf32> to vector<256x4xf32>
    %5 = arith.mulf %2, %4 : vector<256x4xf32>
    %c0_5 = arith.constant 0 : index
    %c0_6 = arith.constant 0 : index
    %6 = vector.load %arg4[%c0_5, %c0_6] : memref<1x4xf32, #tpu.memory_space<vmem>>, vector<1x4xf32>
    %7 = vector.broadcast %6 : vector<1x4xf32> to vector<256x4xf32>
    %8 = arith.addf %5, %7 : vector<256x4xf32>
    %cst_7 = arith.constant 0.000000e+00 : f32
    %9 = vector.broadcast %cst_7 : f32 to vector<256x4xf32>
    %10 = arith.maximumf %8, %9 : vector<256x4xf32>
    %c0_8 = arith.constant 0 : index
    %c0_9 = arith.constant 0 : index
    %11 = vector.load %arg5[%c0_8, %c0_9] : memref<256x4xf32, #tpu.memory_space<vmem>>, vector<256x4xf32>
    tpu.vector_store %arg5[%c0_8, %c0_9], %10 {strides = array<i32>} : memref<256x4xf32, #tpu.memory_space<vmem>>, vector<256x4xf32>,
    return
  }
  func.func @transform_0(%arg0: i32) -> (i32, i32) {
    %c0_i32 = arith.constant 0 : i32
    %c0_i32_0 = arith.constant 0 : i32
    return %arg0, %c0_i32 : i32, i32
  }
  func.func @transform_1(%arg0: i32) -> (i32, i32) {
    %c0_i32 = arith.constant 0 : i32
    %c0_i32_0 = arith.constant 0 : i32
    %c0_i32_1 = arith.constant 0 : i32
    return %c0_i32, %c0_i32_0 : i32, i32
  }
  func.func @transform_2(%arg0: i32) -> (i32, i32) {
    %c0_i32 = arith.constant 0 : i32
    %c0_i32_0 = arith.constant 0 : i32
    %c0_i32_1 = arith.constant 0 : i32
    return %c0_i32, %c0_i32_0 : i32, i32
  }
  func.func @transform_3(%arg0: i32) -> (i32, i32) {
    %c0_i32 = arith.constant 0 : i32
    %c0_i32_0 = arith.constant 0 : i32
    %c0_i32_1 = arith.constant 0 : i32
    return %c0_i32, %c0_i32_0 : i32, i32
  }
  func.func @transform_4(%arg0: i32) -> (i32, i32) {
    %c0_i32 = arith.constant 0 : i32
    %c0_i32_0 = arith.constant 0 : i32
    return %arg0, %c0_i32 : i32, i32
  }
}

</mosaic_0001>

<bundles_post_ra>
// kernel: tpu_custom_call.1
= control target key start
LH: loop header
LB: loop body
LE: loop exit
PB: predicated region body
PF: predicated region fallthrough
CT: control target
= control target key end

     0   :  { %s932_s15 = smov 0   ;;  %s1168_s0 = inlined_call_operand.vmem [shape: f32[512,16], index: 0, kind: input, shape index: {}]   ;;  %s1169_s1 = inlined_call_operand.vmem [shape: f32[16,4], index: 1, kind: input, shape index: {}]   ;;  %s1170_s2 = inlined_call_operand.vmem [shape: f32[1,4], index: 2, kind: input, shape index: {}]   ;;  %s1171_s3 = inlined_call_operand.vmem [shape: f32[1,4], index: 3, kind: input, shape index: {}]   ;;  %s1172_s4 = inlined_call_operand.vmem [shape: f32[512,4], index: 4, kind: output, shape index: {}]  }
   0x1 LB: > { %s756_s16 = sadd.s32 4294967295, %s905_s15   ;;  %p760_p0 = scmp.ge.s32.totalorder %s905_s15, 1  ;;  %s905_s15 = sphi %s932_s15, %s14_s15  }
   0x2   : > { %p163_p1 = scmp.lt.s32.totalorder %s905_s15, 3 }
   0x4   : > { %p164_p2 = pnand %p760_p0, %p163_p1 }
   0x5   : > { %s761_s21 = sshll.u32 (!%p164_p2), %s756_s16, 5 }
   0x6   : > { %167 = sbr.rel (%p164_p2) target bundleno = 247 (0xf7), region = 36  ;;  %p190_p3 = scmp.lt.s32.totalorder (!%p164_p2), %s761_s21, 63 }
   0xb   : > { %v234_v0 = vld [vmem:[%s1169_s1 + $0x8] sm:$0xff]  ;;  %v233_v1 = vld [vmem:[%s1169_s1] sm:$0xff]  ;;  %s1174_s21 = smov (!%p190_p3, %s761_s21), 63  ;;  %vm235_vm0 = vcmask 130048   ;;  %vm667_vm1 = vcmask 31744  }
   0xc   : > { %835 = vmatprep.subr.mxu0 %v234_v0  ;;  %887 = vmatprep.subr.mxu1 %v234_v0  ;;  %s762_s22 = sshll.u32 %s1174_s21, 3  ;;  %v1023_v34 = vld [vmem:[%s1170_s2] ss:$0 sm:$0xff] }
   0xd   : > { %836 = vmatpush3.msra.mxu0 %v234_v0  ;;  %889 = vmatpush3.msra.mxu1 %v234_v0  ;;  %s954_s25 = scalar_lea.vmem %s1168_s0, %s762_s22  ;;  %v1028_v36 = vld [vmem:[%s1171_s3] ss:$0 sm:$0xff]  ;;  %s1041_s6 = scalar_lea.vmem %s1172_s4, %s762_s22 }
   0xe   : > { %837 = vmatprep.subr.mxu0 %v233_v1  ;;  %888 = vmatprep.subr.mxu1 %v233_v1  ;;  %v201_v2 = vld [vmem:[%s954_s25] sm:$0xff]  ;;  %v202_v4 = vld [vmem:[%s954_s25 + $0x8] sm:$0xff]  ;;  %v203_v6 = vld [vmem:[%s954_s25 + $0x10] sm:$0xff] }
   0xf   : > { %838 = vmatpush3.msra.mxu0 %v233_v1  ;;  %890 = vmatpush3.msra.mxu1 %v233_v1  ;;  %v217_v3 = vld [vmem:[%s954_s25 + $0x80] sm:$0xff]  ;;  %v218_v5 = vld [vmem:[%s954_s25 + $0x88] sm:$0xff]  ;;  %v219_v7 = vld [vmem:[%s954_s25 + $0x90] sm:$0xff] }
  0x10   : > { %839 = vmatprep.mubr.msk.f32.mxu0 %vm235_vm0, %v201_v2  ;;  %863 = vmatprep.mubr.msk.f32.mxu1 %vm235_vm0, %v217_v3  ;;  %v204_v8 = vld [vmem:[%s954_s25 + $0x18] sm:$0xff]  ;;  %v205_v10 = vld [vmem:[%s954_s25 + $0x20] sm:$0xff]  ;;  %v206_v12 = vld [vmem:[%s954_s25 + $0x28] sm:$0xff] }
  0x11   : > { %840 = vmatmul.mubr.msk.f32.vlgmr.msra.gmra.mxu0 %vm235_vm0, %v202_v4  ;;  %864 = vmatmul.mubr.msk.f32.vlgmr.msra.gmra.mxu1 %vm235_vm0, %v218_v5  ;;  %v220_v9 = vld [vmem:[%s954_s25 + $0x98] sm:$0xff]  ;;  %v221_v11 = vld [vmem:[%s954_s25 + $0xa0] sm:$0xff]  ;;  %v222_v13 = vld [vmem:[%s954_s25 + $0xa8] sm:$0xff] }
  0x12   : > { %842 = vmatprep.mubr.msk.f32.mxu0 %vm235_vm0, %v203_v6  ;;  %866 = vmatprep.mubr.msk.f32.mxu1 %vm235_vm0, %v219_v7  ;;  %v207_v14 = vld [vmem:[%s954_s25 + $0x30] sm:$0xff]  ;;  %v208_v16 = vld [vmem:[%s954_s25 + $0x38] sm:$0xff]  ;;  %v209_v18 = vld [vmem:[%s954_s25 + $0x40] sm:$0xff] }
  0x13   : > { %v223_v15 = vld [vmem:[%s954_s25 + $0xb0] sm:$0xff]  ;;  %v224_v17 = vld [vmem:[%s954_s25 + $0xb8] sm:$0xff]  ;;  %v225_v19 = vld [vmem:[%s954_s25 + $0xc0] sm:$0xff] }
  0x14   : > { %v210_v20 = vld [vmem:[%s954_s25 + $0x48] sm:$0xff]  ;;  %v211_v22 = vld [vmem:[%s954_s25 + $0x50] sm:$0xff]  ;;  %v212_v24 = vld [vmem:[%s954_s25 + $0x58] sm:$0xff] }
  0x15   : > { %843 = vmatmul.mubr.msk.f32.gmra.mxu0 %vm235_vm0, %v204_v8  ;;  %867 = vmatmul.mubr.msk.f32.gmra.mxu1 %vm235_vm0, %v220_v9  ;;  %v226_v21 = vld [vmem:[%s954_s25 + $0xc8] sm:$0xff]  ;;  %v227_v23 = vld [vmem:[%s954_s25 + $0xd0] sm:$0xff]  ;;  %v228_v25 = vld [vmem:[%s954_s25 + $0xd8] sm:$0xff] }
  0x16   : > { %845 = vmatprep.mubr.msk.f32.mxu0 %vm235_vm0, %v205_v10  ;;  %869 = vmatprep.mubr.msk.f32.mxu1 %vm235_vm0, %v221_v11  ;;  %v213_v26 = vld [vmem:[%s954_s25 + $0x60] sm:$0xff]  ;;  %v214_v28 = vld [vmem:[%s954_s25 + $0x68] sm:$0xff]  ;;  %v215_v30 = vld [vmem:[%s954_s25 + $0x70] sm:$0xff] }
  0x17   : > { %v229_v27 = vld [vmem:[%s954_s25 + $0xe0] sm:$0xff]  ;;  %v230_v29 = vld [vmem:[%s954_s25 + $0xe8] sm:$0xff]  ;;  %v231_v31 = vld [vmem:[%s954_s25 + $0xf0] sm:$0xff] }
  0x18   : > { %v216_v32 = vld [vmem:[%s954_s25 + $0x78] sm:$0xff] }
  0x19   : > { %846 = vmatmul.mubr.msk.f32.gmra.mxu0 %vm235_vm0, %v206_v12  ;;  %870 = vmatmul.mubr.msk.f32.gmra.mxu1 %vm235_vm0, %v222_v13  ;;  %v232_v33 = vld [vmem:[%s954_s25 + $0xf8] sm:$0xff] }
  0x1a   : > { %848 = vmatprep.mubr.msk.f32.mxu0 %vm235_vm0, %v207_v14  ;;  %872 = vmatprep.mubr.msk.f32.mxu1 %vm235_vm0, %v223_v15 }
  0x1d   : > { %849 = vmatmul.mubr.msk.f32.gmra.mxu0 %vm235_vm0, %v208_v16  ;;  %873 = vmatmul.mubr.msk.f32.gmra.mxu1 %vm235_vm0, %v224_v17 }
  0x1e   : > { %851 = vmatprep.mubr.msk.f32.mxu0 %vm235_vm0, %v209_v18  ;;  %875 = vmatprep.mubr.msk.f32.mxu1 %vm235_vm0, %v225_v19 }
  0x21   : > { %852 = vmatmul.mubr.msk.f32.gmra.mxu0 %vm235_vm0, %v210_v20  ;;  %876 = vmatmul.mubr.msk.f32.gmra.mxu1 %vm235_vm0, %v226_v21 }
  0x22   : > { %854 = vmatprep.mubr.msk.f32.mxu0 %vm235_vm0, %v211_v22  ;;  %878 = vmatprep.mubr.msk.f32.mxu1 %vm235_vm0, %v227_v23 }
  0x25   : > { %855 = vmatmul.mubr.msk.f32.gmra.mxu0 %vm235_vm0, %v212_v24  ;;  %879 = vmatmul.mubr.msk.f32.gmra.mxu1 %vm235_vm0, %v228_v25 }
  0x26   : > { %857 = vmatprep.mubr.msk.f32.mxu0 %vm235_vm0, %v213_v26  ;;  %881 = vmatprep.mubr.msk.f32.mxu1 %vm235_vm0, %v229_v27 }
  0x29   : > { %858 = vmatmul.mubr.msk.f32.gmra.mxu0 %vm235_vm0, %v214_v28  ;;  %882 = vmatmul.mubr.msk.f32.gmra.mxu1 %vm235_vm0, %v230_v29 }
  0x2a   : > { %860 = vmatprep.mubr.msk.f32.mxu0 %vm235_vm0, %v215_v30  ;;  %884 = vmatprep.mubr.msk.f32.mxu1 %vm235_vm0, %v231_v31 }
  0x2d   : > { %861 = vmatmul.mubr.msk.f32.gmra.mxu0 %vm235_vm0, %v216_v32  ;;  %885 = vmatmul.mubr.msk.f32.gmra.mxu1 %vm235_vm0, %v232_v33 }
  0xd1   : > { %v841_v35 = vpop.f32.mrf.mxu0  ;;  %v865_v37 = vpop.f32.mrf.mxu1 }
  0xd2   : > { %v565_v38 = vmul.f32 %v841_v35, %v1023_v34  ;;  %v581_v39 = vmul.f32 %v865_v37, %v1023_v34 }
  0xd3   : > { %v398_v40 = vpop.f32.mrf.mxu0  ;;  %v478_v41 = vpop.f32.mrf.mxu1 }
  0xd4   : > { %v604_v42 = vadd.f32 %v1028_v36, %v565_v38  ;;  %v620_v43 = vadd.f32 %v1028_v36, %v581_v39  ;;  %v564_v44 = vmul.f32 %v1023_v34, %v398_v40  ;;  %v580_v45 = vmul.f32 %v1023_v34, %v478_v41 }
  0xd5   : > { %v844_v46 = vpop.f32.mrf.mxu0  ;;  %v868_v47 = vpop.f32.mrf.mxu1 }
  0xd6   : > { %v636_v48 = vmax.f32 %v604_v42, 0.0  ;;  %v652_v49 = vmax.f32 %v620_v43, 0.0  ;;  %v603_v50 = vadd.f32 %v1028_v36, %v564_v44  ;;  %v619_v51 = vadd.f32 %v1028_v36, %v580_v45 }
  0xd7   : > { %v567_v52 = vmul.f32 %v844_v46, %v1023_v34  ;;  %v583_v53 = vmul.f32 %v868_v47, %v1023_v34  ;;  %v408_v54 = vpop.f32.mrf.mxu0  ;;  %v488_v55 = vpop.f32.mrf.mxu1 }
  0xd8   : > { %669 = vst.msk [vmem:[%s1041_s6 + $0x8] sm:$0xff] %vm667_vm1, %v636_v48  ;;  %685 = vst.msk [vmem:[%s1041_s6 + $0x88] sm:$0xff] %vm667_vm1, %v652_v49  ;;  %v635_v56 = vmax.f32 %v603_v50, 0.0  ;;  %v651_v57 = vmax.f32 %v619_v51, 0.0  ;;  %v566_v58 = vmul.f32 %v1023_v34, %v408_v54  ;;  %v582_v59 = vmul.f32 %v1023_v34, %v488_v55 }
  0xd9   : > { %v606_v60 = vadd.f32 %v1028_v36, %v567_v52  ;;  %v622_v61 = vadd.f32 %v1028_v36, %v583_v53  ;;  %v847_v62 = vpop.f32.mrf.mxu0  ;;  %v871_v63 = vpop.f32.mrf.mxu1 }
  0xda   : > { %668 = vst.msk [vmem:[%s1041_s6] sm:$0xff] %vm667_vm1, %v635_v56  ;;  %684 = vst.msk [vmem:[%s1041_s6 + $0x80] sm:$0xff] %vm667_vm1, %v651_v57  ;;  %v605_v0 = vadd.f32 %v1028_v36, %v566_v58  ;;  %v621_v1 = vadd.f32 %v1028_v36, %v582_v59  ;;  %v569_v2 = vmul.f32 %v847_v62, %v1023_v34 }
  0xdb   : > { %v585_v3 = vmul.f32 %v871_v63, %v1023_v34  ;;  %v638_v4 = vmax.f32 %v606_v60, 0.0  ;;  %v654_v5 = vmax.f32 %v622_v61, 0.0  ;;  %v418_v6 = vpop.f32.mrf.mxu0  ;;  %v498_v7 = vpop.f32.mrf.mxu1 }
  0xdc   : > { %v637_v8 = vmax.f32 %v605_v0, 0.0  ;;  %v653_v9 = vmax.f32 %v621_v1, 0.0  ;;  %v608_v10 = vadd.f32 %v1028_v36, %v569_v2  ;;  %v568_v12 = vmul.f32 %v1023_v34, %v418_v6 }
  0xdd   : > { %v624_v11 = vadd.f32 %v1028_v36, %v585_v3  ;;  %671 = vst.msk [vmem:[%s1041_s6 + $0x18] sm:$0xff] %vm667_vm1, %v638_v4  ;;  %687 = vst.msk [vmem:[%s1041_s6 + $0x98] sm:$0xff] %vm667_vm1, %v654_v5  ;;  %v584_v13 = vmul.f32 %v1023_v34, %v498_v7  ;;  %v850_v14 = vpop.f32.mrf.mxu0  ;;  %v874_v15 = vpop.f32.mrf.mxu1 }
  0xde   : > { %670 = vst.msk [vmem:[%s1041_s6 + $0x10] sm:$0xff] %vm667_vm1, %v637_v8  ;;  %686 = vst.msk [vmem:[%s1041_s6 + $0x90] sm:$0xff] %vm667_vm1, %v653_v9  ;;  %v640_v16 = vmax.f32 %v608_v10, 0.0  ;;  %v571_v18 = vmul.f32 %v850_v14, %v1023_v34  ;;  %v587_v19 = vmul.f32 %v874_v15, %v1023_v34  ;;  %v607_v20 = vadd.f32 %v1028_v36, %v568_v12 }
  0xdf   : > { %v656_v17 = vmax.f32 %v624_v11, 0.0  ;;  %v623_v21 = vadd.f32 %v1028_v36, %v584_v13  ;;  %v428_v22 = vpop.f32.mrf.mxu0  ;;  %v508_v23 = vpop.f32.mrf.mxu1 }
  0xe0   : > { %673 = vst.msk [vmem:[%s1041_s6 + $0x28] sm:$0xff] %vm667_vm1, %v640_v16  ;;  %v610_v24 = vadd.f32 %v1028_v36, %v571_v18  ;;  %v626_v25 = vadd.f32 %v1028_v36, %v587_v19  ;;  %v570_v26 = vmul.f32 %v1023_v34, %v428_v22  ;;  %v586_v27 = vmul.f32 %v1023_v34, %v508_v23 }
  0xe1   : > { %689 = vst.msk [vmem:[%s1041_s6 + $0xa8] sm:$0xff] %vm667_vm1, %v656_v17  ;;  %v639_v28 = vmax.f32 %v607_v20, 0.0  ;;  %v655_v29 = vmax.f32 %v623_v21, 0.0  ;;  %v853_v30 = vpop.f32.mrf.mxu0  ;;  %v877_v31 = vpop.f32.mrf.mxu1 }
  0xe2   : > { %v642_v32 = vmax.f32 %v610_v24, 0.0  ;;  %v658_v33 = vmax.f32 %v626_v25, 0.0  ;;  %v609_v35 = vadd.f32 %v1028_v36, %v570_v26  ;;  %v625_v37 = vadd.f32 %v1028_v36, %v586_v27 }
  0xe3   : > { %672 = vst.msk [vmem:[%s1041_s6 + $0x20] sm:$0xff] %vm667_vm1, %v639_v28  ;;  %688 = vst.msk [vmem:[%s1041_s6 + $0xa0] sm:$0xff] %vm667_vm1, %v655_v29  ;;  %v573_v38 = vmul.f32 %v853_v30, %v1023_v34  ;;  %v589_v39 = vmul.f32 %v877_v31, %v1023_v34  ;;  %v438_v40 = vpop.f32.mrf.mxu0  ;;  %v518_v41 = vpop.f32.mrf.mxu1 }
  0xe4   : > { %675 = vst.msk [vmem:[%s1041_s6 + $0x38] sm:$0xff] %vm667_vm1, %v642_v32  ;;  %691 = vst.msk [vmem:[%s1041_s6 + $0xb8] sm:$0xff] %vm667_vm1, %v658_v33  ;;  %v641_v42 = vmax.f32 %v609_v35, 0.0  ;;  %v657_v43 = vmax.f32 %v625_v37, 0.0  ;;  %v572_v44 = vmul.f32 %v1023_v34, %v438_v40  ;;  %v588_v45 = vmul.f32 %v1023_v34, %v518_v41 }
  0xe5   : > { %v612_v46 = vadd.f32 %v1028_v36, %v573_v38  ;;  %v628_v47 = vadd.f32 %v1028_v36, %v589_v39  ;;  %v856_v48 = vpop.f32.mrf.mxu0  ;;  %v880_v49 = vpop.f32.mrf.mxu1 }
  0xe6   : > { %674 = vst.msk [vmem:[%s1041_s6 + $0x30] sm:$0xff] %vm667_vm1, %v641_v42  ;;  %690 = vst.msk [vmem:[%s1041_s6 + $0xb0] sm:$0xff] %vm667_vm1, %v657_v43  ;;  %v611_v50 = vadd.f32 %v1028_v36, %v572_v44  ;;  %v627_v51 = vadd.f32 %v1028_v36, %v588_v45  ;;  %v575_v52 = vmul.f32 %v856_v48, %v1023_v34 }
  0xe7   : > { %v591_v53 = vmul.f32 %v880_v49, %v1023_v34  ;;  %v644_v54 = vmax.f32 %v612_v46, 0.0  ;;  %v660_v55 = vmax.f32 %v628_v47, 0.0  ;;  %v448_v56 = vpop.f32.mrf.mxu0  ;;  %v528_v57 = vpop.f32.mrf.mxu1 }
  0xe8   : > { %v643_v58 = vmax.f32 %v611_v50, 0.0  ;;  %v659_v59 = vmax.f32 %v627_v51, 0.0  ;;  %v614_v60 = vadd.f32 %v1028_v36, %v575_v52  ;;  %v574_v62 = vmul.f32 %v1023_v34, %v448_v56 }
  0xe9   : > { %v630_v61 = vadd.f32 %v1028_v36, %v591_v53  ;;  %677 = vst.msk [vmem:[%s1041_s6 + $0x48] sm:$0xff] %vm667_vm1, %v644_v54  ;;  %693 = vst.msk [vmem:[%s1041_s6 + $0xc8] sm:$0xff] %vm667_vm1, %v660_v55  ;;  %v590_v63 = vmul.f32 %v1023_v34, %v528_v57  ;;  %v859_v0 = vpop.f32.mrf.mxu0  ;;  %v883_v1 = vpop.f32.mrf.mxu1 }
  0xea   : > { %676 = vst.msk [vmem:[%s1041_s6 + $0x40] sm:$0xff] %vm667_vm1, %v643_v58  ;;  %692 = vst.msk [vmem:[%s1041_s6 + $0xc0] sm:$0xff] %vm667_vm1, %v659_v59  ;;  %v646_v2 = vmax.f32 %v614_v60, 0.0  ;;  %v577_v4 = vmul.f32 %v859_v0, %v1023_v34  ;;  %v593_v5 = vmul.f32 %v883_v1, %v1023_v34  ;;  %v613_v6 = vadd.f32 %v1028_v36, %v574_v62 }
  0xeb   : > { %v662_v3 = vmax.f32 %v630_v61, 0.0  ;;  %v629_v7 = vadd.f32 %v1028_v36, %v590_v63  ;;  %v458_v8 = vpop.f32.mrf.mxu0  ;;  %v538_v9 = vpop.f32.mrf.mxu1 }
  0xec   : > { %679 = vst.msk [vmem:[%s1041_s6 + $0x58] sm:$0xff] %vm667_vm1, %v646_v2  ;;  %v616_v10 = vadd.f32 %v1028_v36, %v577_v4  ;;  %v632_v11 = vadd.f32 %v1028_v36, %v593_v5  ;;  %v576_v12 = vmul.f32 %v1023_v34, %v458_v8  ;;  %v592_v13 = vmul.f32 %v1023_v34, %v538_v9 }
  0xed   : > { %695 = vst.msk [vmem:[%s1041_s6 + $0xd8] sm:$0xff] %vm667_vm1, %v662_v3  ;;  %v645_v14 = vmax.f32 %v613_v6, 0.0  ;;  %v661_v15 = vmax.f32 %v629_v7, 0.0  ;;  %v862_v16 = vpop.f32.mrf.mxu0  ;;  %v886_v17 = vpop.f32.mrf.mxu1 }
  0xee   : > { %v648_v18 = vmax.f32 %v616_v10, 0.0  ;;  %v664_v19 = vmax.f32 %v632_v11, 0.0  ;;  %v615_v20 = vadd.f32 %v1028_v36, %v576_v12  ;;  %v631_v21 = vadd.f32 %v1028_v36, %v592_v13 }
  0xef   : > { %678 = vst.msk [vmem:[%s1041_s6 + $0x50] sm:$0xff] %vm667_vm1, %v645_v14  ;;  %694 = vst.msk [vmem:[%s1041_s6 + $0xd0] sm:$0xff] %vm667_vm1, %v661_v15  ;;  %v579_v22 = vmul.f32 %v862_v16, %v1023_v34  ;;  %v595_v23 = vmul.f32 %v886_v17, %v1023_v34  ;;  %v468_v24 = vpop.f32.mrf.mxu0  ;;  %v548_v25 = vpop.f32.mrf.mxu1 }
  0xf0   : > { %681 = vst.msk [vmem:[%s1041_s6 + $0x68] sm:$0xff] %vm667_vm1, %v648_v18  ;;  %697 = vst.msk [vmem:[%s1041_s6 + $0xe8] sm:$0xff] %vm667_vm1, %v664_v19  ;;  %v647_v26 = vmax.f32 %v615_v20, 0.0  ;;  %v663_v27 = vmax.f32 %v631_v21, 0.0  ;;  %v578_v28 = vmul.f32 %v1023_v34, %v468_v24  ;;  %v594_v29 = vmul.f32 %v1023_v34, %v548_v25 }
  0xf1   : > { %v618_v30 = vadd.f32 %v1028_v36, %v579_v22  ;;  %v634_v31 = vadd.f32 %v1028_v36, %v595_v23 }
  0xf2   : > { %680 = vst.msk [vmem:[%s1041_s6 + $0x60] sm:$0xff] %vm667_vm1, %v647_v26  ;;  %696 = vst.msk [vmem:[%s1041_s6 + $0xe0] sm:$0xff] %vm667_vm1, %v663_v27  ;;  %v617_v32 = vadd.f32 %v1028_v36, %v578_v28  ;;  %v633_v33 = vadd.f32 %v1028_v36, %v594_v29 }
  0xf3   : > { %v650_v35 = vmax.f32 %v618_v30, 0.0  ;;  %v666_v37 = vmax.f32 %v634_v31, 0.0 }
  0xf4   : > { %v649_v38 = vmax.f32 %v617_v32, 0.0  ;;  %v665_v39 = vmax.f32 %v633_v33, 0.0 }
  0xf5   : > { %683 = vst.msk [vmem:[%s1041_s6 + $0x78] sm:$0xff] %vm667_vm1, %v650_v35  ;;  %699 = vst.msk [vmem:[%s1041_s6 + $0xf8] sm:$0xff] %vm667_vm1, %v666_v37 }
  0xf6   : > { %682 = vst.msk [vmem:[%s1041_s6 + $0x70] sm:$0xff] %vm667_vm1, %v649_v38  ;;  %698 = vst.msk [vmem:[%s1041_s6 + $0xf0] sm:$0xff] %vm667_vm1, %v665_v39 }
  0xf7 PF: > { %s14_s15 = sadd.s32 1, %s905_s15  }
  0xf8   : > { %p11_p4 = scmp.ge.s32.totalorder %s14_s15, 4  }
  0xfa   :  { %13 = sbr.rel (!%p11_p4) target bundleno = 1 (0x1), region = 66 }

</bundles_post_ra>
